<compile_context>
chip_gen: v6e
topology: v6e:2x2x1
jax: 0.10.0
libtpu: 0.0.40
codegen_flags: <defaults>
</compile_context>

<pallas_src>
import jax
import jax.numpy as jnp
from jax.experimental import pallas as pl
from jax.experimental.pallas import tpu as pltpu

LN_EPS = 1e-5  # PyTorch nn.LayerNorm default

H1, H2, H3 = 256, 256, 128  # hidden sizes of fc1/fc2/fc3


def _round_up(n, m):
    return ((n + m - 1) // m) * m


def _layernorm(h, gamma, beta):
    mu = jnp.mean(h, axis=-1, keepdims=True)
    var = jnp.mean((h - mu) ** 2, axis=-1, keepdims=True)
    return (h - mu) * jax.lax.rsqrt(var + LN_EPS) * gamma + beta


def dqn_kernel(x_ref,
               w1_ref, b1_ref, g1_ref, be1_ref,
               w2_ref, b2_ref, g2_ref, be2_ref,
               w3_ref, b3_ref, g3_ref, be3_ref,
               w4_ref, b4_ref,
               o_ref):
    # Hoist (1, N) parameter reads once (no re-read / re-broadcast per layer).
    b1 = b1_ref[...]; g1 = g1_ref[...]; be1 = be1_ref[...]
    b2 = b2_ref[...]; g2 = g2_ref[...]; be2 = be2_ref[...]
    b3 = b3_ref[...]; g3 = g3_ref[...]; be3 = be3_ref[...]
    b4 = b4_ref[...]

    bf16 = jnp.bfloat16
    x = x_ref[...].astype(bf16)

    # fc1 -> ln1 -> relu  (dropout = identity in eval)
    h = jnp.dot(x, w1_ref[...], preferred_element_type=jnp.float32) + b1
    h = jnp.maximum(_layernorm(h, g1, be1), 0.0)

    # fc2 -> ln2 -> relu  (dropout = identity in eval)
    h = jnp.dot(h.astype(bf16), w2_ref[...],
                preferred_element_type=jnp.float32) + b2
    h = jnp.maximum(_layernorm(h, g2, be2), 0.0)

    # fc3 -> ln3 -> relu
    h = jnp.dot(h.astype(bf16), w3_ref[...],
                preferred_element_type=jnp.float32) + b3
    h = jnp.maximum(_layernorm(h, g3, be3), 0.0)

    # fc4 (Q-values, lane-dense padded output)
    q = jnp.dot(h.astype(bf16), w4_ref[...],
                preferred_element_type=jnp.float32) + b4
    o_ref[...] = q.astype(o_ref.dtype)


def dqn_forward(x, params, *, batch_tile=256):
    """DQN forward pass. x: [B, state_size] float32. Returns [B, action_size] f32."""
    assert batch_tile % 8 == 0, "batch_tile must be a multiple of 8"
    B, S = x.shape
    A = params["w4"].shape[1]

    f32, bf16 = jnp.float32, jnp.bfloat16

    # Lane-dense padding of feature / action dims.
    S_pad = _round_up(max(S, 128), 128)
    A_pad = _round_up(max(A, 128), 128)

    # Batch tiling: clamp the tile for small batches, pad batch to a multiple.
    tile = min(batch_tile, _round_up(B, 8))
    B_pad = _round_up(B, tile)

    # Pad input (zeros in the padded K columns do not change the matmul).
    xp = jnp.zeros((B_pad, S_pad), f32).at[:B, :S].set(x.astype(f32))

    # Weights: bf16 for the MXU; pad fc1's K dim and fc4's N dim with zeros.
    w1 = jnp.zeros((S_pad, H1), bf16).at[:S, :].set(params["w1"].astype(bf16))
    w2 = params["w2"].astype(bf16)
    w3 = params["w3"].astype(bf16)
    w4 = jnp.zeros((H3, A_pad), bf16).at[:, :A].set(params["w4"].astype(bf16))
    b4 = jnp.zeros((1, A_pad), f32).at[:, :A].set(params["b4"].astype(f32))

    # Order must match kernel signature.
    ordered = [
        w1, params["b1"], params["g1"], params["be1"],
        w2, params["b2"], params["g2"], params["be2"],
        w3, params["b3"], params["g3"], params["be3"],
        w4, b4,
    ]

    # Small weights: full array resident across all grid steps (constant index_map).
    def full_spec(arr):
        return pl.BlockSpec(arr.shape, lambda i: (0, 0))

    grid = (B_pad // tile,)
    in_specs = [pl.BlockSpec((tile, S_pad), lambda i: (i, 0))] + [
        full_spec(a) for a in ordered
    ]
    out_specs = pl.BlockSpec((tile, A_pad), lambda i: (i, 0))

    q_padded = pl.pallas_call(
        dqn_kernel,
        out_shape=jax.ShapeDtypeStruct((B_pad, A_pad), f32),
        grid_spec=pl.GridSpec(
            grid=grid,
            in_specs=in_specs,
            out_specs=out_specs,
        ),
        compiler_params=pltpu.CompilerParams(
            dimension_semantics=("parallel",)),
    )(xp, *ordered)

    return q_padded[:B, :A]


def init_params(key, state_size, action_size):
    """Deterministic init mirroring the PyTorch module:
       orthogonal_ linear weights, zero biases, LayerNorm gamma=1 / beta=0."""
    orth = jax.nn.initializers.orthogonal()
    k1, k2, k3, k4 = jax.random.split(key, 4)
    # Stored as [in, out] (transpose of PyTorch [out, in]); orthogonal either way.
    w1 = orth(k1, (state_size, H1), jnp.float32)
    w2 = orth(k2, (H1, H2), jnp.float32)
    w3 = orth(k3, (H2, H3), jnp.float32)
    w4 = orth(k4, (H3, action_size), jnp.float32)
    p = {
        "w1": w1, "b1": jnp.zeros((1, H1), jnp.float32),
        "g1": jnp.ones((1, H1), jnp.float32), "be1": jnp.zeros((1, H1), jnp.float32),
        "w2": w2, "b2": jnp.zeros((1, H2), jnp.float32),
        "g2": jnp.ones((1, H2), jnp.float32), "be2": jnp.zeros((1, H2), jnp.float32),
        "w3": w3, "b3": jnp.zeros((1, H3), jnp.float32),
        "g3": jnp.ones((1, H3), jnp.float32), "be3": jnp.zeros((1, H3), jnp.float32),
        "w4": w4, "b4": jnp.zeros((1, action_size), jnp.float32),
    }
    return p


def dqn_forward_ref(x, p, *, matmul_dtype=jnp.float32):
    """Pure-JAX reference. matmul_dtype=bfloat16 mirrors the kernel's MXU precision."""
    def ln(h, g, b):
        mu = jnp.mean(h, axis=-1, keepdims=True)
        var = jnp.mean((h - mu) ** 2, axis=-1, keepdims=True)
        return (h - mu) * jax.lax.rsqrt(var + LN_EPS) * g + b

    def lin(h, w, b):
        return jnp.dot(h.astype(matmul_dtype), w.astype(matmul_dtype),
                       preferred_element_type=jnp.float32) + b

    h = jnp.maximum(ln(lin(x, p["w1"], p["b1"]), p["g1"], p["be1"]), 0.0)
    h = jnp.maximum(ln(lin(h, p["w2"], p["b2"]), p["g2"], p["be2"]), 0.0)
    h = jnp.maximum(ln(lin(h, p["w3"], p["b3"]), p["g3"], p["be3"]), 0.0)
    return lin(h, p["w4"], p["b4"])


if __name__ == "__main__":
    key = jax.random.PRNGKey(0)
    k_param, k_x = jax.random.split(key)

    state_size = 16   # small synthetic state vector
    action_size = 8
    batch = 32        # small demo batch; wrapper clamps the batch tile

    params = init_params(k_param, state_size, action_size)
    x = jax.random.normal(k_x, (batch, state_size), dtype=jnp.float32)

    q = dqn_forward(x, params)        # default batch_tile=256, clamps to 32 here
    q = jax.block_until_ready(q)
    assert q.shape == (batch, action_size)

    # Tight check vs precision-matched (bf16-matmul, f32-accumulate) reference.
    q_ref_bf16 = dqn_forward_ref(x, params, matmul_dtype=jnp.bfloat16)
    assert jnp.allclose(q, q_ref_bf16, atol=2e-3, rtol=2e-3), "mismatch vs bf16 reference"

    # Loose check vs full-f32 reference (bf16 MXU quantization tolerance).
    q_ref_f32 = dqn_forward_ref(x, params, matmul_dtype=jnp.float32)
    assert jnp.allclose(q, q_ref_f32, atol=1e-1, rtol=1e-1), "mismatch vs f32 reference"

    print("KERNEL_OK")
</pallas_src>

<mosaic_0001>
module attributes {stable_mosaic.version = 11 : i64} {
  func.func @dqn_kernel(%arg0: i32, %arg1: memref<32x128xf32, #tpu.memory_space<vmem>>, %arg2: memref<128x256xbf16, #tpu.memory_space<vmem>>, %arg3: memref<1x256xf32, #tpu.memory_space<vmem>>, %arg4: memref<1x256xf32, #tpu.memory_space<vmem>>, %arg5: memref<1x256xf32, #tpu.memory_space<vmem>>, %arg6: memref<256x256xbf16, #tpu.memory_space<vmem>>, %arg7: memref<1x256xf32, #tpu.memory_space<vmem>>, %arg8: memref<1x256xf32, #tpu.memory_space<vmem>>, %arg9: memref<1x256xf32, #tpu.memory_space<vmem>>, %arg10: memref<256x128xbf16, #tpu.memory_space<vmem>>, %arg11: memref<1x128xf32, #tpu.memory_space<vmem>>, %arg12: memref<1x128xf32, #tpu.memory_space<vmem>>, %arg13: memref<1x128xf32, #tpu.memory_space<vmem>>, %arg14: memref<128x128xbf16, #tpu.memory_space<vmem>>, %arg15: memref<1x128xf32, #tpu.memory_space<vmem>>, %arg16: memref<32x128xf32, #tpu.memory_space<vmem>>) attributes {dimension_semantics = [#tpu.dimension_semantics<parallel>], iteration_bounds = array<i64: 1>, scalar_prefetch = 0 : i64, scratch_operands = 0 : i64, tpu.core_type = #tpu.core_type<tc>, window_params = [{transform_indices = @transform_0, window_bounds = array<i64: 32, 128>}, {pipeline_mode = #tpu.pipeline_mode<synchronous>, transform_indices = @transform_1, window_bounds = array<i64: 128, 256>}, {pipeline_mode = #tpu.pipeline_mode<synchronous>, transform_indices = @transform_2, window_bounds = array<i64: 1, 256>}, {pipeline_mode = #tpu.pipeline_mode<synchronous>, transform_indices = @transform_3, window_bounds = array<i64: 1, 256>}, {pipeline_mode = #tpu.pipeline_mode<synchronous>, transform_indices = @transform_4, window_bounds = array<i64: 1, 256>}, {pipeline_mode = #tpu.pipeline_mode<synchronous>, transform_indices = @transform_5, window_bounds = array<i64: 256, 256>}, {pipeline_mode = #tpu.pipeline_mode<synchronous>, transform_indices = @transform_6, window_bounds = array<i64: 1, 256>}, {pipeline_mode = #tpu.pipeline_mode<synchronous>, transform_indices = @transform_7, window_bounds = array<i64: 1, 256>}, {pipeline_mode = #tpu.pipeline_mode<synchronous>, transform_indices = @transform_8, window_bounds = array<i64: 1, 256>}, {pipeline_mode = #tpu.pipeline_mode<synchronous>, transform_indices = @transform_9, window_bounds = array<i64: 256, 128>}, {pipeline_mode = #tpu.pipeline_mode<synchronous>, transform_indices = @transform_10, window_bounds = array<i64: 1, 128>}, {pipeline_mode = #tpu.pipeline_mode<synchronous>, transform_indices = @transform_11, window_bounds = array<i64: 1, 128>}, {pipeline_mode = #tpu.pipeline_mode<synchronous>, transform_indices = @transform_12, window_bounds = array<i64: 1, 128>}, {pipeline_mode = #tpu.pipeline_mode<synchronous>, transform_indices = @transform_13, window_bounds = array<i64: 128, 128>}, {pipeline_mode = #tpu.pipeline_mode<synchronous>, transform_indices = @transform_14, window_bounds = array<i64: 1, 128>}, {transform_indices = @transform_15, window_bounds = array<i64: 32, 128>}]} {
    %c0 = arith.constant 0 : index
    %c0_0 = arith.constant 0 : index
    %0 = vector.load %arg3[%c0, %c0_0] : memref<1x256xf32, #tpu.memory_space<vmem>>, vector<1x256xf32>
    %c0_1 = arith.constant 0 : index
    %c0_2 = arith.constant 0 : index
    %1 = vector.load %arg4[%c0_1, %c0_2] : memref<1x256xf32, #tpu.memory_space<vmem>>, vector<1x256xf32>
    %c0_3 = arith.constant 0 : index
    %c0_4 = arith.constant 0 : index
    %2 = vector.load %arg5[%c0_3, %c0_4] : memref<1x256xf32, #tpu.memory_space<vmem>>, vector<1x256xf32>
    %c0_5 = arith.constant 0 : index
    %c0_6 = arith.constant 0 : index
    %3 = vector.load %arg7[%c0_5, %c0_6] : memref<1x256xf32, #tpu.memory_space<vmem>>, vector<1x256xf32>
    %c0_7 = arith.constant 0 : index
    %c0_8 = arith.constant 0 : index
    %4 = vector.load %arg8[%c0_7, %c0_8] : memref<1x256xf32, #tpu.memory_space<vmem>>, vector<1x256xf32>
    %c0_9 = arith.constant 0 : index
    %c0_10 = arith.constant 0 : index
    %5 = vector.load %arg9[%c0_9, %c0_10] : memref<1x256xf32, #tpu.memory_space<vmem>>, vector<1x256xf32>
    %c0_11 = arith.constant 0 : index
    %c0_12 = arith.constant 0 : index
    %6 = vector.load %arg11[%c0_11, %c0_12] : memref<1x128xf32, #tpu.memory_space<vmem>>, vector<1x128xf32>
    %c0_13 = arith.constant 0 : index
    %c0_14 = arith.constant 0 : index
    %7 = vector.load %arg12[%c0_13, %c0_14] : memref<1x128xf32, #tpu.memory_space<vmem>>, vector<1x128xf32>
    %c0_15 = arith.constant 0 : index
    %c0_16 = arith.constant 0 : index
    %8 = vector.load %arg13[%c0_15, %c0_16] : memref<1x128xf32, #tpu.memory_space<vmem>>, vector<1x128xf32>
    %c0_17 = arith.constant 0 : index
    %c0_18 = arith.constant 0 : index
    %9 = vector.load %arg15[%c0_17, %c0_18] : memref<1x128xf32, #tpu.memory_space<vmem>>, vector<1x128xf32>
    %c0_19 = arith.constant 0 : index
    %c0_20 = arith.constant 0 : index
    %10 = vector.load %arg1[%c0_19, %c0_20] : memref<32x128xf32, #tpu.memory_space<vmem>>, vector<32x128xf32>
    %11 = arith.truncf %10 : vector<32x128xf32> to vector<32x128xbf16>
    %c0_21 = arith.constant 0 : index
    %c0_22 = arith.constant 0 : index
    %12 = vector.load %arg2[%c0_21, %c0_22] : memref<128x256xbf16, #tpu.memory_space<vmem>>, vector<128x256xbf16>
    %cst = arith.constant dense<0.000000e+00> : vector<32x256xf32>
    %13 = tpu.matmul %11, %12, %cst {dimension_numbers = #tpu.dot_dimension_numbers<[1], [0], [0], [1], [0, 0, 1, 1], [], []>} : vector<32x128xbf16>, vector<128x256xbf16>, vector<32x256xf32> -> vector<32x256xf32>
    %14 = vector.broadcast %0 : vector<1x256xf32> to vector<32x256xf32>
    %15 = arith.addf %13, %14 : vector<32x256xf32>
    %cst_23 = arith.constant dense<0.000000e+00> : vector<32xf32>
    %16 = vector.multi_reduction <add>, %15, %cst_23 [1] : vector<32x256xf32> to vector<32xf32>
    %17 = vector.shape_cast %16 : vector<32xf32> to vector<32x1xf32>
    %cst_24 = arith.constant 2.560000e+02 : f32
    %18 = vector.broadcast %cst_24 : f32 to vector<32x1xf32>
    %19 = arith.divf %17, %18 : vector<32x1xf32>
    %20 = vector.broadcast %19 : vector<32x1xf32> to vector<32x256xf32>
    %21 = arith.subf %15, %20 : vector<32x256xf32>
    %22 = arith.mulf %21, %21 : vector<32x256xf32>
    %cst_25 = arith.constant dense<0.000000e+00> : vector<32xf32>
    %23 = vector.multi_reduction <add>, %22, %cst_25 [1] : vector<32x256xf32> to vector<32xf32>
    %24 = vector.shape_cast %23 : vector<32xf32> to vector<32x1xf32>
    %cst_26 = arith.constant 2.560000e+02 : f32
    %25 = vector.broadcast %cst_26 : f32 to vector<32x1xf32>
    %26 = arith.divf %24, %25 : vector<32x1xf32>
    %27 = vector.broadcast %19 : vector<32x1xf32> to vector<32x256xf32>
    %28 = arith.subf %15, %27 : vector<32x256xf32>
    %cst_27 = arith.constant 9.99999974E-6 : f32
    %29 = vector.broadcast %cst_27 : f32 to vector<32x1xf32>
    %30 = arith.addf %26, %29 : vector<32x1xf32>
    %31 = math.rsqrt %30 : vector<32x1xf32>
    %32 = vector.broadcast %31 : vector<32x1xf32> to vector<32x256xf32>
    %33 = arith.mulf %28, %32 : vector<32x256xf32>
    %34 = vector.broadcast %1 : vector<1x256xf32> to vector<32x256xf32>
    %35 = arith.mulf %33, %34 : vector<32x256xf32>
    %36 = vector.broadcast %2 : vector<1x256xf32> to vector<32x256xf32>
    %37 = arith.addf %35, %36 : vector<32x256xf32>
    %cst_28 = arith.constant 0.000000e+00 : f32
    %38 = vector.broadcast %cst_28 : f32 to vector<32x256xf32>
    %39 = arith.maximumf %37, %38 : vector<32x256xf32>
    %40 = arith.truncf %39 : vector<32x256xf32> to vector<32x256xbf16>
    %c0_29 = arith.constant 0 : index
    %c0_30 = arith.constant 0 : index
    %41 = vector.load %arg6[%c0_29, %c0_30] : memref<256x256xbf16, #tpu.memory_space<vmem>>, vector<256x256xbf16>
    %cst_31 = arith.constant dense<0.000000e+00> : vector<32x256xf32>
    %42 = tpu.matmul %40, %41, %cst_31 {dimension_numbers = #tpu.dot_dimension_numbers<[1], [0], [0], [1], [0, 0, 1, 1], [], []>} : vector<32x256xbf16>, vector<256x256xbf16>, vector<32x256xf32> -> vector<32x256xf32>
    %43 = vector.broadcast %3 : vector<1x256xf32> to vector<32x256xf32>
    %44 = arith.addf %42, %43 : vector<32x256xf32>
    %cst_32 = arith.constant dense<0.000000e+00> : vector<32xf32>
    %45 = vector.multi_reduction <add>, %44, %cst_32 [1] : vector<32x256xf32> to vector<32xf32>
    %46 = vector.shape_cast %45 : vector<32xf32> to vector<32x1xf32>
    %cst_33 = arith.constant 2.560000e+02 : f32
    %47 = vector.broadcast %cst_33 : f32 to vector<32x1xf32>
    %48 = arith.divf %46, %47 : vector<32x1xf32>
    %49 = vector.broadcast %48 : vector<32x1xf32> to vector<32x256xf32>
    %50 = arith.subf %44, %49 : vector<32x256xf32>
    %51 = arith.mulf %50, %50 : vector<32x256xf32>
    %cst_34 = arith.constant dense<0.000000e+00> : vector<32xf32>
    %52 = vector.multi_reduction <add>, %51, %cst_34 [1] : vector<32x256xf32> to vector<32xf32>
    %53 = vector.shape_cast %52 : vector<32xf32> to vector<32x1xf32>
    %cst_35 = arith.constant 2.560000e+02 : f32
    %54 = vector.broadcast %cst_35 : f32 to vector<32x1xf32>
    %55 = arith.divf %53, %54 : vector<32x1xf32>
    %56 = vector.broadcast %48 : vector<32x1xf32> to vector<32x256xf32>
    %57 = arith.subf %44, %56 : vector<32x256xf32>
    %cst_36 = arith.constant 9.99999974E-6 : f32
    %58 = vector.broadcast %cst_36 : f32 to vector<32x1xf32>
    %59 = arith.addf %55, %58 : vector<32x1xf32>
    %60 = math.rsqrt %59 : vector<32x1xf32>
    %61 = vector.broadcast %60 : vector<32x1xf32> to vector<32x256xf32>
    %62 = arith.mulf %57, %61 : vector<32x256xf32>
    %63 = vector.broadcast %4 : vector<1x256xf32> to vector<32x256xf32>
    %64 = arith.mulf %62, %63 : vector<32x256xf32>
    %65 = vector.broadcast %5 : vector<1x256xf32> to vector<32x256xf32>
    %66 = arith.addf %64, %65 : vector<32x256xf32>
    %cst_37 = arith.constant 0.000000e+00 : f32
    %67 = vector.broadcast %cst_37 : f32 to vector<32x256xf32>
    %68 = arith.maximumf %66, %67 : vector<32x256xf32>
    %69 = arith.truncf %68 : vector<32x256xf32> to vector<32x256xbf16>
    %c0_38 = arith.constant 0 : index
    %c0_39 = arith.constant 0 : index
    %70 = vector.load %arg10[%c0_38, %c0_39] : memref<256x128xbf16, #tpu.memory_space<vmem>>, vector<256x128xbf16>
    %cst_40 = arith.constant dense<0.000000e+00> : vector<32x128xf32>
    %71 = tpu.matmul %69, %70, %cst_40 {dimension_numbers = #tpu.dot_dimension_numbers<[1], [0], [0], [1], [0, 0, 1, 1], [], []>} : vector<32x256xbf16>, vector<256x128xbf16>, vector<32x128xf32> -> vector<32x128xf32>
    %72 = vector.broadcast %6 : vector<1x128xf32> to vector<32x128xf32>
    %73 = arith.addf %71, %72 : vector<32x128xf32>
    %cst_41 = arith.constant dense<0.000000e+00> : vector<32xf32>
    %74 = vector.multi_reduction <add>, %73, %cst_41 [1] : vector<32x128xf32> to vector<32xf32>
    %75 = vector.shape_cast %74 : vector<32xf32> to vector<32x1xf32>
    %cst_42 = arith.constant 1.280000e+02 : f32
    %76 = vector.broadcast %cst_42 : f32 to vector<32x1xf32>
    %77 = arith.divf %75, %76 : vector<32x1xf32>
    %78 = vector.broadcast %77 : vector<32x1xf32> to vector<32x128xf32>
    %79 = arith.subf %73, %78 : vector<32x128xf32>
    %80 = arith.mulf %79, %79 : vector<32x128xf32>
    %cst_43 = arith.constant dense<0.000000e+00> : vector<32xf32>
    %81 = vector.multi_reduction <add>, %80, %cst_43 [1] : vector<32x128xf32> to vector<32xf32>
    %82 = vector.shape_cast %81 : vector<32xf32> to vector<32x1xf32>
    %cst_44 = arith.constant 1.280000e+02 : f32
    %83 = vector.broadcast %cst_44 : f32 to vector<32x1xf32>
    %84 = arith.divf %82, %83 : vector<32x1xf32>
    %85 = vector.broadcast %77 : vector<32x1xf32> to vector<32x128xf32>
    %86 = arith.subf %73, %85 : vector<32x128xf32>
    %cst_45 = arith.constant 9.99999974E-6 : f32
    %87 = vector.broadcast %cst_45 : f32 to vector<32x1xf32>
    %88 = arith.addf %84, %87 : vector<32x1xf32>
    %89 = math.rsqrt %88 : vector<32x1xf32>
    %90 = vector.broadcast %89 : vector<32x1xf32> to vector<32x128xf32>
    %91 = arith.mulf %86, %90 : vector<32x128xf32>
    %92 = vector.broadcast %7 : vector<1x128xf32> to vector<32x128xf32>
    %93 = arith.mulf %91, %92 : vector<32x128xf32>
    %94 = vector.broadcast %8 : vector<1x128xf32> to vector<32x128xf32>
    %95 = arith.addf %93, %94 : vector<32x128xf32>
    %cst_46 = arith.constant 0.000000e+00 : f32
    %96 = vector.broadcast %cst_46 : f32 to vector<32x128xf32>
    %97 = arith.maximumf %95, %96 : vector<32x128xf32>
    %98 = arith.truncf %97 : vector<32x128xf32> to vector<32x128xbf16>
    %c0_47 = arith.constant 0 : index
    %c0_48 = arith.constant 0 : index
    %99 = vector.load %arg14[%c0_47, %c0_48] : memref<128x128xbf16, #tpu.memory_space<vmem>>, vector<128x128xbf16>
    %cst_49 = arith.constant dense<0.000000e+00> : vector<32x128xf32>
    %100 = tpu.matmul %98, %99, %cst_49 {dimension_numbers = #tpu.dot_dimension_numbers<[1], [0], [0], [1], [0, 0, 1, 1], [], []>} : vector<32x128xbf16>, vector<128x128xbf16>, vector<32x128xf32> -> vector<32x128xf32>
    %101 = vector.broadcast %9 : vector<1x128xf32> to vector<32x128xf32>
    %102 = arith.addf %100, %101 : vector<32x128xf32>
    %c0_50 = arith.constant 0 : index
    %c0_51 = arith.constant 0 : index
    %103 = vector.load %arg16[%c0_50, %c0_51] : memref<32x128xf32, #tpu.memory_space<vmem>>, vector<32x128xf32>
    tpu.vector_store %arg16[%c0_50, %c0_51], %102 {strides = array<i32>} : memref<32x128xf32, #tpu.memory_space<vmem>>, vector<32x128xf32>,
    return
  }
  func.func @transform_0(%arg0: i32) -> (i32, i32) {
    %c0_i32 = arith.constant 0 : i32
    %c0_i32_0 = arith.constant 0 : i32
    return %arg0, %c0_i32 : i32, i32
  }
  func.func @transform_1(%arg0: i32) -> (i32, i32) {
    %c0_i32 = arith.constant 0 : i32
    %c0_i32_0 = arith.constant 0 : i32
    %c0_i32_1 = arith.constant 0 : i32
    return %c0_i32, %c0_i32_0 : i32, i32
  }
  func.func @transform_2(%arg0: i32) -> (i32, i32) {
    %c0_i32 = arith.constant 0 : i32
    %c0_i32_0 = arith.constant 0 : i32
    %c0_i32_1 = arith.constant 0 : i32
    return %c0_i32, %c0_i32_0 : i32, i32
  }
  func.func @transform_3(%arg0: i32) -> (i32, i32) {
    %c0_i32 = arith.constant 0 : i32
    %c0_i32_0 = arith.constant 0 : i32
    %c0_i32_1 = arith.constant 0 : i32
    return %c0_i32, %c0_i32_0 : i32, i32
  }
  func.func @transform_4(%arg0: i32) -> (i32, i32) {
    %c0_i32 = arith.constant 0 : i32
    %c0_i32_0 = arith.constant 0 : i32
    %c0_i32_1 = arith.constant 0 : i32
    return %c0_i32, %c0_i32_0 : i32, i32
  }
  func.func @transform_5(%arg0: i32) -> (i32, i32) {
    %c0_i32 = arith.constant 0 : i32
    %c0_i32_0 = arith.constant 0 : i32
    %c0_i32_1 = arith.constant 0 : i32
    return %c0_i32, %c0_i32_0 : i32, i32
  }
  func.func @transform_6(%arg0: i32) -> (i32, i32) {
    %c0_i32 = arith.constant 0 : i32
    %c0_i32_0 = arith.constant 0 : i32
    %c0_i32_1 = arith.constant 0 : i32
    return %c0_i32, %c0_i32_0 : i32, i32
  }
  func.func @transform_7(%arg0: i32) -> (i32, i32) {
    %c0_i32 = arith.constant 0 : i32
    %c0_i32_0 = arith.constant 0 : i32
    %c0_i32_1 = arith.constant 0 : i32
    return %c0_i32, %c0_i32_0 : i32, i32
  }
  func.func @transform_8(%arg0: i32) -> (i32, i32) {
    %c0_i32 = arith.constant 0 : i32
    %c0_i32_0 = arith.constant 0 : i32
    %c0_i32_1 = arith.constant 0 : i32
    return %c0_i32, %c0_i32_0 : i32, i32
  }
  func.func @transform_9(%arg0: i32) -> (i32, i32) {
    %c0_i32 = arith.constant 0 : i32
    %c0_i32_0 = arith.constant 0 : i32
    %c0_i32_1 = arith.constant 0 : i32
    return %c0_i32, %c0_i32_0 : i32, i32
  }
  func.func @transform_10(%arg0: i32) -> (i32, i32) {
    %c0_i32 = arith.constant 0 : i32
    %c0_i32_0 = arith.constant 0 : i32
    %c0_i32_1 = arith.constant 0 : i32
    return %c0_i32, %c0_i32_0 : i32, i32
  }
  func.func @transform_11(%arg0: i32) -> (i32, i32) {
    %c0_i32 = arith.constant 0 : i32
    %c0_i32_0 = arith.constant 0 : i32
    %c0_i32_1 = arith.constant 0 : i32
    return %c0_i32, %c0_i32_0 : i32, i32
  }
  func.func @transform_12(%arg0: i32) -> (i32, i32) {
    %c0_i32 = arith.constant 0 : i32
    %c0_i32_0 = arith.constant 0 : i32
    %c0_i32_1 = arith.constant 0 : i32
    return %c0_i32, %c0_i32_0 : i32, i32
  }
  func.func @transform_13(%arg0: i32) -> (i32, i32) {
    %c0_i32 = arith.constant 0 : i32
    %c0_i32_0 = arith.constant 0 : i32
    %c0_i32_1 = arith.constant 0 : i32
    return %c0_i32, %c0_i32_0 : i32, i32
  }
  func.func @transform_14(%arg0: i32) -> (i32, i32) {
    %c0_i32 = arith.constant 0 : i32
    %c0_i32_0 = arith.constant 0 : i32
    %c0_i32_1 = arith.constant 0 : i32
    return %c0_i32, %c0_i32_0 : i32, i32
  }
  func.func @transform_15(%arg0: i32) -> (i32, i32) {
    %c0_i32 = arith.constant 0 : i32
    %c0_i32_0 = arith.constant 0 : i32
    return %arg0, %c0_i32 : i32, i32
  }
}

</mosaic_0001>

<bundles_post_ra>
// kernel: tpu_custom_call.1
= control target key start
LH: loop header
LB: loop body
LE: loop exit
PB: predicated region body
PF: predicated region fallthrough
CT: control target
= control target key end

     0   :  { %20 = vsyncpa [#allocation3], 0  ;;  %s1823_s0 = inlined_call_operand.hbm [shape: f32[32,128], index: 0, kind: input, shape index: {}]   ;;  %s1824_s1 = inlined_call_operand.hbm [shape: bf16[128,256], index: 1, kind: input, shape index: {}]   ;;  %s1825_s2 = inlined_call_operand.vmem [shape: f32[1,256], index: 2, kind: input, shape index: {}]   ;;  %s1826_s3 = inlined_call_operand.vmem [shape: f32[1,256], index: 3, kind: input, shape index: {}]   ;;  %s1827_s4 = inlined_call_operand.vmem [shape: f32[1,256], index: 4, kind: input, shape index: {}]   ;;  %s1828_s5 = inlined_call_operand.hbm [shape: bf16[256,256], index: 5, kind: input, shape index: {}]   ;;  %s1829_s6 = inlined_call_operand.vmem [shape: f32[1,256], index: 6, kind: input, shape index: {}]   ;;  %s1830_s7 = inlined_call_operand.vmem [shape: f32[1,256], index: 7, kind: input, shape index: {}]   ;;  %s1831_s8 = inlined_call_operand.vmem [shape: f32[1,256], index: 8, kind: input, shape index: {}]   ;;  %s1832_s9 = inlined_call_operand.hbm [shape: bf16[256,128], index: 9, kind: input, shape index: {}]   ;;  %s1833_s10 = inlined_call_operand.vmem [shape: f32[1,128], index: 10, kind: input, shape index: {}]   ;;  %s1834_s11 = inlined_call_operand.vmem [shape: f32[1,128], index: 11, kind: input, shape index: {}]   ;;  %s1835_s12 = inlined_call_operand.vmem [shape: f32[1,128], index: 12, kind: input, shape index: {}]   ;;  %s1836_s13 = inlined_call_operand.hbm [shape: bf16[128,128], index: 13, kind: input, shape index: {}]   ;;  %s1837_s14 = inlined_call_operand.vmem [shape: f32[1,128], index: 14, kind: input, shape index: {}]   ;;  %s1838_s15 = inlined_call_operand.hbm [shape: f32[32,128], index: 15, kind: output, shape index: {}]  }
   0x1   :  { %21 = vsyncpa [#allocation6], 0 }
   0x2   :  { %22 = vsyncpa [#allocation9], 0 }
   0x3   :  { %23 = vsyncpa [#allocation4], 0  ;;  %s1570_s18 = smov [#allocation5]   ;;  %s1571_s20 = smov [#allocation8]  }
   0x4   :  { %s41_s19 = sshll.u32 %s1570_s18, 4  ;;  %s77_s21 = sshll.u32 %s1571_s20, 4  ;;  %s42_s19 = int_to_ptr.vmem [resolvable:$true] %s41_s19  ;;  %s78_s21 = int_to_ptr.vmem [resolvable:$true] %s77_s21 }
   0x5   :  { %s1450_s22 = scalar_lea.vmem %s42_s19, 2048  ;;  %p1455_p1 = scmp.lt.s32.totalorder %s42_s19, %s42_s19 }
   0x6   :  { %p1451_p0 = scmp.ne.s32.totalorder %s42_s19, %s1450_s22  ;;  %p1456_p2 = scmp.lt.s32.totalorder %s1450_s22, %s1450_s22 }
   0x8   :  { %p1457_p3 = por %p1456_p2, %p1455_p1 }
   0xa   :  { %p1458_p4 = pnand %p1457_p3, %p1451_p0 }
   0xc   :  { %1461 = shalt.err (!%p1458_p4)
}
   0xd   :  { %s1572_s23 = smov 128   ;;  %s1573_s24 = smov 8  }
   0xe   :  { %47 = dma.hbm_to_vmem [thread:$0]  %s1824_s1, 2048, %s42_s19, [#allocation6], %s1572_s23, %s1572_s23, %s1573_s24  }
   0xf   :  { %s1470_s27 = scalar_lea.vmem %s78_s21, 2048  ;;  %p1475_p6 = scmp.lt.s32.totalorder %s78_s21, %s78_s21 }
  0x10   :  { %p1471_p5 = scmp.ne.s32.totalorder %s78_s21, %s1470_s27  ;;  %p1476_p7 = scmp.lt.s32.totalorder %s1470_s27, %s1470_s27 }
  0x12   :  { %p1477_p8 = por %p1476_p7, %p1475_p6 }
  0x14   :  { %p1478_p9 = pnand %p1477_p8, %p1471_p5 }
  0x16   :  { %1481 = shalt.err (!%p1478_p9)
}
  0x17   :  { %s1574_s28 = smov 64   ;;  %s1575_s29 = smov 4  }
  0x18   :  { %83 = dma.hbm_to_vmem [thread:$0]  %s1832_s9, 2048, %s78_s21, [#allocation9], %s1574_s28, %s1574_s28, %s1575_s29  }
  0x19   :  { %s1576_s17 = smov [#allocation2]   ;;  %s1577_s20 = smov [#allocation7]  }
  0x1a   :  { %s29_s18 = sshll.u32 %s1576_s17, 4  ;;  %s59_s1 = sshll.u32 %s1577_s20, 4  ;;  %s30_s18 = int_to_ptr.vmem [resolvable:$true] %s29_s18  ;;  %s60_s1 = int_to_ptr.vmem [resolvable:$true] %s59_s1 }
  0x1b   :  { %s1490_s19 = scalar_lea.vmem %s30_s18, 512  ;;  %p1495_p11 = scmp.lt.s32.totalorder %s30_s18, %s30_s18 }
  0x1c   :  { %p1491_p10 = scmp.ne.s32.totalorder %s30_s18, %s1490_s19  ;;  %p1496_p12 = scmp.lt.s32.totalorder %s1490_s19, %s1490_s19 }
  0x1e   :  { %p1497_p13 = por %p1496_p12, %p1495_p11 }
  0x20   :  { %p1498_p0 = pnand %p1497_p13, %p1491_p10 }
  0x22   :  { %1501 = shalt.err (!%p1498_p0)
}
  0x23   :  { %35 = dma.hbm_to_vmem [thread:$0]  %s1823_s0, 512, %s30_s18, [#allocation3], %s1572_s23, %s1572_s23, %s1573_s24  }
  0x24   :  { %s1510_s9 = scalar_lea.vmem %s60_s1, 4096  ;;  %p1515_p2 = scmp.lt.s32.totalorder %s60_s1, %s60_s1 }
  0x25   :  { %p1511_p1 = scmp.ne.s32.totalorder %s60_s1, %s1510_s9  ;;  %p1516_p3 = scmp.lt.s32.totalorder %s1510_s9, %s1510_s9 }
  0x27   :  { %p1517_p4 = por %p1516_p3, %p1515_p2 }
  0x29   :  { %p1518_p5 = pnand %p1517_p4, %p1511_p1 }
  0x2b   :  { %1521 = shalt.err (!%p1518_p5)
}
  0x2c   :  { %65 = dma.hbm_to_vmem [thread:$0]  %s1828_s5, 4096, %s60_s1, [#allocation6], %s1572_s23, %s1572_s23, %s1573_s24  }
  0x2d   :  { %s1578_s27 = smov [#allocation10]  }
  0x2e   :  { %s95_s30 = sshll.u32 %s1578_s27, 4  ;;  %s96_s30 = int_to_ptr.vmem [resolvable:$true] %s95_s30 }
  0x2f   :  { %s1530_s16 = scalar_lea.vmem %s96_s30, 1024  ;;  %p1535_p7 = scmp.lt.s32.totalorder %s96_s30, %s96_s30 }
  0x30   :  { %p1531_p6 = scmp.ne.s32.totalorder %s96_s30, %s1530_s16  ;;  %p1536_p8 = scmp.lt.s32.totalorder %s1530_s16, %s1530_s16 }
  0x32   :  { %p1537_p9 = por %p1536_p8, %p1535_p7 }
  0x34   :  { %p1538_p10 = pnand %p1537_p9, %p1531_p6 }
  0x36   :  { %1541 = shalt.err (!%p1538_p10)
}
  0x37   :  { %101 = dma.hbm_to_vmem [thread:$0]  %s1836_s13, 1024, %s96_s30, [#allocation9], %s1574_s28, %s1574_s28, %s1575_s29  }
  0x38   :  { %1562 = dma.done.wait [#allocation3], 512  }
  0x39   :  { %1563 = vsyncadd [#allocation3], 4294966784 }
  0x3a   :  { %1564 = dma.done.wait [#allocation6], 6144  }
  0x3b   :  { %1565 = vsyncadd [#allocation6], 4294961152 }
  0x3c   :  { %1566 = dma.done.wait [#allocation9], 3072  }
  0x3d   :  { %1567 = vsyncadd [#allocation9], 4294964224  ;;  %v1579_v0 = vmov 0   ;;  %v1322_v1 = vld [vmem:[#allocation5 + $0x74] ss:$8 sps:$4 sm:$0xff]   ;;  %v130_v17 = vld [vmem:[#allocation2] sm:$0xff]  ;;  %v153_v23 = vlaneseq }
  0x3e   :  { %275 = vmatprep.mubr.bf16.mxu0 %v1579_v0  ;;  %v1324_v2 = vld [vmem:[#allocation5 + $0x70] ss:$8 sps:$4 sm:$0xff]   ;;  %243 = vmatprep.subr.bf16.mxu0 %v1322_v1  ;;  %v1325_v3 = vld [vmem:[#allocation5 + $0x64] ss:$8 sps:$4 sm:$0xff]   ;;  %v1327_v4 = vld [vmem:[#allocation5 + $0x60] ss:$8 sps:$4 sm:$0xff]  }
  0x3f   :  { %244 = vmatpush1.bf16.msra.mxu0 %v1324_v2  ;;  %v1328_v5 = vld [vmem:[#allocation5 + $0x54] ss:$8 sps:$4 sm:$0xff]   ;;  %v1330_v6 = vld [vmem:[#allocation5 + $0x50] ss:$8 sps:$4 sm:$0xff]   ;;  %v1331_v7 = vld [vmem:[#allocation5 + $0x44] ss:$8 sps:$4 sm:$0xff]  }
  0x40   :  { %245 = vmatprep.subr.bf16.mxu0 %v1325_v3  ;;  %v1333_v8 = vld [vmem:[#allocation5 + $0x40] ss:$8 sps:$4 sm:$0xff]   ;;  %v1334_v9 = vld [vmem:[#allocation5 + $0x34] ss:$8 sps:$4 sm:$0xff]   ;;  %v1336_v10 = vld [vmem:[#allocation5 + $0x30] ss:$8 sps:$4 sm:$0xff]  }
  0x41   :  { %v1337_v11 = vld [vmem:[#allocation5 + $0x24] ss:$8 sps:$4 sm:$0xff]   ;;  %v1339_v12 = vld [vmem:[#allocation5 + $0x20] ss:$8 sps:$4 sm:$0xff]   ;;  %v1340_v13 = vld [vmem:[#allocation5 + $0x14] ss:$8 sps:$4 sm:$0xff]  }
  0x42   :  { %v1342_v14 = vld [vmem:[#allocation5 + $0x10] ss:$8 sps:$4 sm:$0xff]   ;;  %v1343_v15 = vld [vmem:[#allocation5 + $0x4] ss:$8 sps:$4 sm:$0xff]   ;;  %v1345_v16 = vld [vmem:[#allocation5] ss:$8 sps:$4 sm:$0xff]  }
  0x43   :  { %246 = vmatpush1.bf16.msra.mxu0 %v1327_v4  ;;  %v131_v18 = vld [vmem:[#allocation2 + $0x8] sm:$0xff]  ;;  %v132_v20 = vld [vmem:[#allocation2 + $0x10] sm:$0xff]  ;;  %v133_v21 = vld [vmem:[#allocation2 + $0x18] sm:$0xff]  ;;  %v154_v24 = vshrl.u32 %v153_v23, 7  ;;  %s1580_s21 = smov [#allocation11]  }
  0x44   :  { %247 = vmatprep.subr.bf16.mxu0 %v1328_v5  ;;  %v134_v19 = vpack.c.bf16 %v131_v18, %v130_v17  ;;  %v135_v22 = vpack.c.bf16 %v133_v21, %v132_v20  ;;  %v120_v27 = vld [vmem:[%s1825_s2] sm:$0x3]  ;;  %v1346_v50 = vld [vmem:[#allocation7 + $0x74] ss:$8 sps:$4 sm:$0xff]   ;;  %v1348_v51 = vld [vmem:[#allocation7 + $0x70] ss:$8 sps:$4 sm:$0xff]  }
  0x45   :  { %v1691_v25 = vsub.s32 0, %v154_v24  ;;  %v1693_v26 = vsub.s32 1, %v154_v24  ;;  %v1349_v52 = vld [vmem:[#allocation7 + $0x64] ss:$8 sps:$4 sm:$0xff]   ;;  %614 = vmatprep.subr.bf16.mxu1 %v1346_v50  ;;  %v1351_v53 = vld [vmem:[#allocation7 + $0x60] ss:$8 sps:$4 sm:$0xff]  }
  0x46   :  { %615 = vmatpush1.bf16.msra.mxu1 %v1348_v51  ;;  %v1352_v54 = vld [vmem:[#allocation7 + $0x54] ss:$8 sps:$4 sm:$0xff]   ;;  %v1354_v55 = vld [vmem:[#allocation7 + $0x50] ss:$8 sps:$4 sm:$0xff]   ;;  %v1355_v56 = vld [vmem:[#allocation7 + $0x44] ss:$8 sps:$4 sm:$0xff]  }
  0x47   :  { %248 = vmatpush1.bf16.msra.mxu0 %v1330_v6  ;;  %v156_v28 = vrot.slane %v120_v27, %v1691_v25  ;;  %v160_v29 = vrot.slane %v120_v27, %v1693_v26  ;;  %616 = vmatprep.subr.bf16.mxu1 %v1349_v52  ;;  %v1357_v57 = vld [vmem:[#allocation7 + $0x40] ss:$8 sps:$4 sm:$0xff]   ;;  %v1358_v58 = vld [vmem:[#allocation7 + $0x34] ss:$8 sps:$4 sm:$0xff]   ;;  %v1360_v59 = vld [vmem:[#allocation7 + $0x30] ss:$8 sps:$4 sm:$0xff]  }
  0x48   :  { %249 = vmatprep.subr.bf16.mxu0 %v1331_v7  ;;  %v1361_v60 = vld [vmem:[#allocation7 + $0x24] ss:$8 sps:$4 sm:$0xff]   ;;  %v1363_v61 = vld [vmem:[#allocation7 + $0x20] ss:$8 sps:$4 sm:$0xff]   ;;  %v1364_v62 = vld [vmem:[#allocation7 + $0x14] ss:$8 sps:$4 sm:$0xff]  }
  0x49   :  { %v1366_v63 = vld [vmem:[#allocation7 + $0x10] ss:$8 sps:$4 sm:$0xff]   ;;  %v1369_v1 = vld [vmem:[#allocation7] ss:$8 sps:$4 sm:$0xff]   ;;  %s1163_s26 = sshll.u32 %s1580_s21, 4  ;;  %s1164_s26 = int_to_ptr.vmem [resolvable:$true] %s1163_s26 }
  0x4a   :  { %617 = vmatpush1.bf16.msra.mxu1 %v1351_v53  ;;  %s1542_s27 = scalar_lea.vmem %s1164_s26, 512  ;;  %p1547_p12 = scmp.lt.s32.totalorder %s1164_s26, %s1164_s26 }
  0x4b   :  { %250 = vmatpush1.bf16.msra.mxu0 %v1333_v8  ;;  %618 = vmatprep.subr.bf16.mxu1 %v1352_v54  ;;  %p1543_p11 = scmp.ne.s32.totalorder %s1164_s26, %s1542_s27  ;;  %p1548_p13 = scmp.lt.s32.totalorder %s1542_s27, %s1542_s27 }
  0x4c   :  { %251 = vmatprep.subr.bf16.mxu0 %v1334_v9 }
  0x4d   :  { %p1549_p0 = por %p1548_p13, %p1547_p12 }
  0x4e   :  { %619 = vmatpush1.bf16.msra.mxu1 %v1354_v55 }
  0x4f   :  { %252 = vmatpush1.bf16.msra.mxu0 %v1336_v10  ;;  %620 = vmatprep.subr.bf16.mxu1 %v1355_v56  ;;  %p1550_p1 = pnand %p1549_p0, %p1543_p11 }
  0x50   :  { %253 = vmatprep.subr.bf16.mxu0 %v1337_v11 }
  0x52   :  { %621 = vmatpush1.bf16.msra.mxu1 %v1357_v57 }
  0x53   :  { %254 = vmatpush1.bf16.msra.mxu0 %v1339_v12  ;;  %622 = vmatprep.subr.bf16.mxu1 %v1358_v58 }
  0x54   :  { %255 = vmatprep.subr.bf16.mxu0 %v1340_v13 }
  0x56   :  { %623 = vmatpush1.bf16.msra.mxu1 %v1360_v59  ;;  %v121_v59 = vld [vmem:[%s1826_s3] sm:$0x3] }
  0x57   :  { %256 = vmatpush1.bf16.msra.mxu0 %v1342_v14  ;;  %624 = vmatprep.subr.bf16.mxu1 %v1361_v60 }
  0x58   :  { %257 = vmatprep.subr.bf16.mxu0 %v1343_v15 }
  0x5a   :  { %625 = vmatpush1.bf16.msra.mxu1 %v1363_v61  ;;  %v122_v61 = vld [vmem:[%s1827_s4] sm:$0x3] }
  0x5b   :  { %258 = vmatpush1.bf16.msra.mxu0 %v1345_v16  ;;  %626 = vmatprep.subr.bf16.mxu1 %v1364_v62  ;;  %v365_v62 = vrot.slane %v121_v59, %v1691_v25 }
  0x5e   :  { %276 = vmatmul.mubr.bf16.vlgmr.msra.gmra.mxu0 %v134_v19  ;;  %627 = vmatpush1.bf16.msra.mxu1 %v1366_v63  ;;  %v369_v63 = vrot.slane %v121_v59, %v1693_v26 }
  0x5f   :  { %285 = vmatprep.mubr.bf16.mxu0 %v1579_v0  ;;  %v1367_v0 = vld [vmem:[#allocation7 + $0x4] ss:$8 sps:$4 sm:$0xff]  }
  0x60   :  { %628 = vmatprep.subr.bf16.mxu1 %v1367_v0 }
  0x62   :  { %629 = vmatpush1.bf16.msra.mxu1 %v1369_v1 }
  0x66   :  { %286 = vmatmul.mubr.bf16.gmra.mxu0 %v135_v22 }
 0x11e   :  { %v277_v30 = vpop.f32.mrf.mxu0 }
 0x11f   :  { %v278_v32 = vadd.f32 %v277_v30, %v156_v28 }
 0x120   :  { %v279_v31 = vpop.f32.mrf.mxu0 }
 0x121   :  { %v280_v33 = vadd.f32 %v279_v31, %v160_v29  ;;  %v1370_v31 = vld [vmem:[#allocation7 + $0xf4] ss:$8 sps:$4 sm:$0xff]  }
 0x122   :  { %v281_v34 = vpop.f32.mrf.mxu0  ;;  %630 = vmatprep.subr.bf16.mxu1 %v1370_v31 }
 0x123   :  { %v296_v35 = vadd.f32 %v280_v33, %v278_v32  ;;  %v282_v37 = vadd.f32 %v281_v34, %v156_v28  ;;  %v1373_v34 = vld [vmem:[#allocation7 + $0xe4] ss:$8 sps:$4 sm:$0xff]  }
 0x124   :  { %v283_v36 = vpop.f32.mrf.mxu0 }
 0x125   :  { %v284_v38 = vadd.f32 %v283_v36, %v160_v29  ;;  %297 = vadd.xlane.f32.xlu0 %v296_v35  ;;  %v1375_v35 = vld [vmem:[#allocation7 + $0xe0] ss:$8 sps:$4 sm:$0xff]   ;;  %v1376_v36 = vld [vmem:[#allocation7 + $0xd4] ss:$8 sps:$4 sm:$0xff]  }
 0x126   :  { %v287_v39 = vpop.f32.mrf.mxu0 }
 0x127   :  { %v299_v40 = vadd.f32 %v284_v38, %v282_v37  ;;  %v288_v42 = vadd.f32 %v287_v39, %v156_v28  ;;  %v1381_v39 = vld [vmem:[#allocation7 + $0xc0] ss:$8 sps:$4 sm:$0xff]  }
 0x128   :  { %v289_v41 = vpop.f32.mrf.mxu0 }
 0x129   :  { %v290_v43 = vadd.f32 %v289_v41, %v160_v29  ;;  %300 = vadd.xlane.f32.xlu0 %v299_v40  ;;  %v1382_v40 = vld [vmem:[#allocation7 + $0xb4] ss:$8 sps:$4 sm:$0xff]   ;;  %v1384_v41 = vld [vmem:[#allocation7 + $0xb0] ss:$8 sps:$4 sm:$0xff]  }
 0x12a   :  { %v291_v44 = vpop.f32.mrf.mxu0 }
 0x12b   :  { %v302_v45 = vadd.f32 %v290_v43, %v288_v42  ;;  %v292_v47 = vadd.f32 %v291_v44, %v156_v28  ;;  %v1388_v44 = vld [vmem:[#allocation7 + $0x94] ss:$8 sps:$4 sm:$0xff]  }
 0x12c   :  { %v293_v46 = vpop.f32.mrf.mxu0 }
 0x12d   :  { %v294_v48 = vadd.f32 %v293_v46, %v160_v29  ;;  %303 = vadd.xlane.f32.xlu1 %v302_v45  ;;  %v1390_v45 = vld [vmem:[#allocation7 + $0x90] ss:$8 sps:$4 sm:$0xff]   ;;  %v1391_v46 = vld [vmem:[#allocation7 + $0x84] ss:$8 sps:$4 sm:$0xff]  }
 0x12f   :  { %v305_v49 = vadd.f32 %v294_v48, %v292_v47 }
 0x131   :  { %306 = vadd.xlane.f32.xlu1 %v305_v49 }
 0x1ae   :  { %v298_v2 = vpop.xlane.xlu0 %297 }
 0x1af   :  { %v309_v3 = vmul.f32 0.00390625, %v298_v2 }
 0x1b1   :  { %v1700_v4 = vsub.f32 %v278_v32, %v309_v3  ;;  %v1702_v5 = vsub.f32 %v280_v33, %v309_v3  ;;  %v1372_v33 = vld [vmem:[#allocation7 + $0xf0] ss:$8 sps:$4 sm:$0xff]   ;;  %v388_v3 = vrot.slane %v122_v61, %v1693_v26 }
 0x1b2   :  { %v301_v6 = vpop.xlane.xlu0 %300  ;;  %631 = vmatpush2.bf16.msra.mxu1 %v1372_v33 }
 0x1b3   :  { %v310_v7 = vmul.f32 0.00390625, %v301_v6  ;;  %v321_v8 = vmul.f32 %v1700_v4, %v1700_v4  ;;  %v322_v9 = vmul.f32 %v1702_v5, %v1702_v5  ;;  %632 = vmatprep.subr.bf16.mxu1 %v1373_v34 }
 0x1b5   :  { %v1708_v10 = vsub.f32 %v282_v37, %v310_v7  ;;  %v1710_v11 = vsub.f32 %v284_v38, %v310_v7  ;;  %v329_v12 = vadd.f32 %v322_v9, %v321_v8  ;;  %v1378_v37 = vld [vmem:[#allocation7 + $0xd0] ss:$8 sps:$4 sm:$0xff]   ;;  %v1379_v38 = vld [vmem:[#allocation7 + $0xc4] ss:$8 sps:$4 sm:$0xff]   ;;  %v384_v7 = vrot.slane %v122_v61, %v1691_v25 }
 0x1b6   :  { %v304_v13 = vpop.xlane.xlu1 %303  ;;  %633 = vmatpush2.bf16.msra.mxu1 %v1375_v35 }
 0x1b7   :  { %v311_v14 = vmul.f32 0.00390625, %v304_v13  ;;  %330 = vadd.xlane.f32.xlu0 %v329_v12  ;;  %v323_v15 = vmul.f32 %v1708_v10, %v1708_v10  ;;  %v324_v16 = vmul.f32 %v1710_v11, %v1710_v11  ;;  %634 = vmatprep.subr.bf16.mxu1 %v1376_v36 }
 0x1b9   :  { %v1716_v17 = vsub.f32 %v288_v42, %v311_v14  ;;  %v1718_v18 = vsub.f32 %v290_v43, %v311_v14  ;;  %v332_v19 = vadd.f32 %v324_v16, %v323_v15  ;;  %v1385_v42 = vld [vmem:[#allocation7 + $0xa4] ss:$8 sps:$4 sm:$0xff]   ;;  %v1387_v43 = vld [vmem:[#allocation7 + $0xa0] ss:$8 sps:$4 sm:$0xff]  }
 0x1ba   :  { %v307_v20 = vpop.xlane.xlu1 %306  ;;  %635 = vmatpush2.bf16.msra.mxu1 %v1378_v37 }
 0x1bb   :  { %v312_v21 = vmul.f32 0.00390625, %v307_v20  ;;  %333 = vadd.xlane.f32.xlu1 %v332_v19  ;;  %v325_v22 = vmul.f32 %v1716_v17, %v1716_v17  ;;  %v326_v23 = vmul.f32 %v1718_v18, %v1718_v18  ;;  %636 = vmatprep.subr.bf16.mxu1 %v1379_v38 }
 0x1bd   :  { %v1724_v24 = vsub.f32 %v292_v47, %v312_v21  ;;  %v1726_v27 = vsub.f32 %v294_v48, %v312_v21  ;;  %v335_v28 = vadd.f32 %v326_v23, %v325_v22  ;;  %v1393_v47 = vld [vmem:[#allocation7 + $0x80] ss:$8 sps:$4 sm:$0xff]  }
 0x1be   :  { %637 = vmatpush2.bf16.msra.mxu1 %v1381_v39 }
 0x1bf   :  { %336 = vadd.xlane.f32.xlu0 %v335_v28  ;;  %v327_v29 = vmul.f32 %v1724_v24, %v1724_v24  ;;  %v328_v30 = vmul.f32 %v1726_v27, %v1726_v27  ;;  %638 = vmatprep.subr.bf16.mxu1 %v1382_v40 }
 0x1c1   :  { %v338_v32 = vadd.f32 %v328_v30, %v327_v29 }
 0x1c2   :  { %639 = vmatpush2.bf16.msra.mxu1 %v1384_v41 }
 0x1c3   :  { %339 = vadd.xlane.f32.xlu1 %v338_v32  ;;  %640 = vmatprep.subr.bf16.mxu1 %v1385_v42 }
 0x1c6   :  { %641 = vmatpush2.bf16.msra.mxu1 %v1387_v43 }
 0x1c7   :  { %642 = vmatprep.subr.bf16.mxu1 %v1388_v44 }
 0x1ca   :  { %643 = vmatpush2.bf16.msra.mxu1 %v1390_v45 }
 0x1cb   :  { %644 = vmatprep.subr.bf16.mxu1 %v1391_v46 }
 0x1ce   :  { %645 = vmatpush2.bf16.msra.mxu1 %v1393_v47 }
 0x240   :  { %v331_v48 = vpop.xlane.xlu0 %330 }
 0x241   :  { %v341_v49 = vmul.f32 0.00390625, %v331_v48 }
 0x243   :  { %v345_v50 = vadd.f32 1e-05, %v341_v49 }
 0x244   :  { %v334_v51 = vpop.xlane.xlu1 %333 }
 0x245   :  { %1418 = vrsqrt.f32 %v345_v50  ;;  %v342_v52 = vmul.f32 0.00390625, %v334_v51 }
 0x247   :  { %v346_v53 = vadd.f32 1e-05, %v342_v52 }
 0x248   :  { %v337_v54 = vpop.xlane.xlu0 %336 }
 0x249   :  { %1420 = vrsqrt.f32 %v346_v53  ;;  %v343_v55 = vmul.f32 0.00390625, %v337_v54 }
 0x24b   :  { %v347_v56 = vadd.f32 1e-05, %v343_v55 }
 0x24c   :  { %v340_v57 = vpop.xlane.xlu1 %339 }
 0x24d   :  { %1422 = vrsqrt.f32 %v347_v56  ;;  %v344_v58 = vmul.f32 0.00390625, %v340_v57 }
 0x24f   :  { %v348_v60 = vadd.f32 1e-05, %v344_v58 }
 0x251   :  { %1424 = vrsqrt.f32 %v348_v60 }
 0x252   :  { %v1419_v0 = vpop.eup %1418 }
 0x253   :  { %v354_v1 = vmul.f32 %v1419_v0, %v1702_v5  ;;  %v353_v2 = vmul.f32 %v1419_v0, %v1700_v4 }
 0x255   :  { %v373_v6 = vmul.f32 %v369_v63, %v354_v1  ;;  %v372_v8 = vmul.f32 %v365_v62, %v353_v2 }
 0x256   :  { %v1421_v9 = vpop.eup %1420 }
 0x257   :  { %v356_v12 = vmul.f32 %v1421_v9, %v1710_v11  ;;  %v355_v13 = vmul.f32 %v1421_v9, %v1708_v10  ;;  %v392_v14 = vadd.f32 %v388_v3, %v373_v6  ;;  %v391_v19 = vadd.f32 %v384_v7, %v372_v8 }
 0x259   :  { %v375_v15 = vmul.f32 %v369_v63, %v356_v12  ;;  %v374_v16 = vmul.f32 %v365_v62, %v355_v13  ;;  %v400_v23 = vmax.f32 %v392_v14, 0.0  ;;  %v399_v29 = vmax.f32 %v391_v19, 0.0 }
 0x25a   :  { %v1423_v20 = vpop.eup %1422 }
 0x25b   :  { %v394_v21 = vadd.f32 %v388_v3, %v375_v15  ;;  %v393_v5 = vadd.f32 %v384_v7, %v374_v16  ;;  %v358_v4 = vmul.f32 %v1423_v20, %v1718_v18  ;;  %v357_v22 = vmul.f32 %v1423_v20, %v1716_v17 }
 0x25d   :  { %v402_v28 = vmax.f32 %v394_v21, 0.0  ;;  %v401_v30 = vmax.f32 %v393_v5, 0.0  ;;  %v377_v31 = vmul.f32 %v369_v63, %v358_v4  ;;  %v376_v11 = vmul.f32 %v365_v62, %v357_v22 }
 0x25e   :  { %v1425_v32 = vpop.eup %1424 }
 0x25f   :  { %v408_v33 = vpack.c.bf16 %v402_v28, %v400_v23  ;;  %v407_v10 = vpack.c.bf16 %v401_v30, %v399_v29  ;;  %v360_v34 = vmul.f32 %v1425_v32, %v1726_v27  ;;  %v359_v35 = vmul.f32 %v1425_v32, %v1724_v24  ;;  %v123_v24 = vld [vmem:[%s1829_s6] sm:$0x3] }
 0x260   :  { %v396_v37 = vadd.f32 %v388_v3, %v377_v31  ;;  %v395_v38 = vadd.f32 %v384_v7, %v376_v11  ;;  %v447_v27 = vrot.slane %v123_v24, %v1691_v25  ;;  %v451_v46 = vrot.slane %v123_v24, %v1693_v26  ;;  %v1405_v24 = vld [vmem:[#allocation8 + $0x10] sm:$0xff]  }
 0x261   :  { %646 = vmatprep.mubr.bf16.mxu1 %v408_v33  ;;  %v379_v36 = vmul.f32 %v369_v63, %v360_v34  ;;  %v378_v18 = vmul.f32 %v365_v62, %v359_v35 }
 0x262   :  { %647 = vmatmul.mubr.bf16.vlgmr.msra.gmra.mxu1 %v407_v10  ;;  %v404_v40 = vmax.f32 %v396_v37, 0.0  ;;  %v403_v42 = vmax.f32 %v395_v38, 0.0  ;;  %v1394_v37 = vld [vmem:[#allocation8 + $0x78] sm:$0xff]   ;;  %v1396_v38 = vld [vmem:[#allocation8 + $0x70] sm:$0xff]  }
 0x263   :  { %v398_v17 = vadd.f32 %v388_v3, %v379_v36  ;;  %v397_v39 = vadd.f32 %v384_v7, %v378_v18  ;;  %v1395_v18 = vld [vmem:[#allocation8 + $0x38] sm:$0xff]   ;;  %1253 = vmatprep.subr.bf16.mxu0 %v1394_v37 }
 0x264   :  { %1254 = vmatpush3.bf16.msra.mxu0 %v1395_v18 }
 0x265   :  { %v406_v41 = vmax.f32 %v398_v17, 0.0  ;;  %v405_v43 = vmax.f32 %v397_v39, 0.0  ;;  %v1397_v17 = vld [vmem:[#allocation8 + $0x30] sm:$0xff]   ;;  %1255 = vmatprep.subr.bf16.mxu0 %v1396_v38  ;;  %v1398_v39 = vld [vmem:[#allocation8 + $0x68] sm:$0xff]  }
 0x267   :  { %v410_v44 = vpack.c.bf16 %v406_v41, %v404_v40  ;;  %v409_v45 = vpack.c.bf16 %v405_v43, %v403_v42  ;;  %v1399_v40 = vld [vmem:[#allocation8 + $0x28] sm:$0xff]   ;;  %v1400_v41 = vld [vmem:[#allocation8 + $0x60] sm:$0xff]   ;;  %v1402_v43 = vld [vmem:[#allocation8 + $0x58] sm:$0xff]  }
 0x268   :  { %1256 = vmatpush3.bf16.msra.mxu0 %v1397_v17  ;;  %v1401_v42 = vld [vmem:[#allocation8 + $0x20] sm:$0xff]  }
 0x269   :  { %656 = vmatprep.mubr.bf16.mxu1 %v410_v44  ;;  %1257 = vmatprep.subr.bf16.mxu0 %v1398_v39  ;;  %v1403_v44 = vld [vmem:[#allocation8 + $0x18] sm:$0xff]  }
 0x26a   :  { %657 = vmatmul.mubr.bf16.gmra.mxu1 %v409_v45  ;;  %v1404_v45 = vld [vmem:[#allocation8 + $0x50] sm:$0xff]  }
 0x26c   :  { %1258 = vmatpush3.bf16.msra.mxu0 %v1399_v40 }
 0x26d   :  { %1259 = vmatprep.subr.bf16.mxu0 %v1400_v41 }
 0x270   :  { %1260 = vmatpush3.bf16.msra.mxu0 %v1401_v42 }
 0x271   :  { %1261 = vmatprep.subr.bf16.mxu0 %v1402_v43 }
 0x274   :  { %1262 = vmatpush3.bf16.msra.mxu0 %v1403_v44 }
 0x275   :  { %1263 = vmatprep.subr.bf16.mxu0 %v1404_v45 }
 0x278   :  { %1264 = vmatpush3.bf16.msra.mxu0 %v1405_v24 }
 0x322   :  { %v648_v47 = vpop.f32.mrf.mxu1 }
 0x323   :  { %v649_v49 = vadd.f32 %v648_v47, %v447_v27  ;;  %v1408_v47 = vld [vmem:[#allocation8 + $0x40] sm:$0xff]  }
 0x324   :  { %v650_v48 = vpop.f32.mrf.mxu1 }
 0x325   :  { %v651_v50 = vadd.f32 %v650_v48, %v451_v46  ;;  %v1409_v48 = vld [vmem:[#allocation8] sm:$0xff]  }
 0x326   :  { %v652_v51 = vpop.f32.mrf.mxu1 }
 0x327   :  { %v667_v52 = vadd.f32 %v651_v50, %v649_v49  ;;  %v653_v54 = vadd.f32 %v652_v51, %v447_v27 }
 0x328   :  { %v654_v53 = vpop.f32.mrf.mxu1 }
 0x329   :  { %v655_v55 = vadd.f32 %v654_v53, %v451_v46  ;;  %668 = vadd.xlane.f32.xlu0 %v667_v52 }
 0x32a   :  { %v658_v56 = vpop.f32.mrf.mxu1 }
 0x32b   :  { %v670_v57 = vadd.f32 %v655_v55, %v653_v54  ;;  %v659_v59 = vadd.f32 %v658_v56, %v447_v27 }
 0x32c   :  { %v660_v58 = vpop.f32.mrf.mxu1 }
 0x32d   :  { %v661_v60 = vadd.f32 %v660_v58, %v451_v46  ;;  %671 = vadd.xlane.f32.xlu1 %v670_v57 }
 0x32e   :  { %v662_v61 = vpop.f32.mrf.mxu1 }
 0x32f   :  { %v673_v62 = vadd.f32 %v661_v60, %v659_v59  ;;  %v663_v0 = vadd.f32 %v662_v61, %v447_v27  ;;  %v1406_v27 = vld [vmem:[#allocation8 + $0x48] sm:$0xff]  }
 0x330   :  { %v664_v63 = vpop.f32.mrf.mxu1  ;;  %1265 = vmatprep.subr.bf16.mxu0 %v1406_v27 }
 0x331   :  { %v665_v1 = vadd.f32 %v664_v63, %v451_v46  ;;  %674 = vadd.xlane.f32.xlu0 %v673_v62  ;;  %v1407_v46 = vld [vmem:[#allocation8 + $0x8] sm:$0xff]   ;;  %v125_v62 = vld [vmem:[%s1831_s8] sm:$0x3] }
 0x332   :  { %1266 = vmatpush3.bf16.msra.mxu0 %v1407_v46 }
 0x333   :  { %v676_v2 = vadd.f32 %v665_v1, %v663_v0  ;;  %1267 = vmatprep.subr.bf16.mxu0 %v1408_v47 }
 0x335   :  { %677 = vadd.xlane.f32.xlu1 %v676_v2 }
 0x336   :  { %1268 = vmatpush3.bf16.msra.mxu0 %v1409_v48 }
 0x3b2   :  { %v669_v3 = vpop.xlane.xlu0 %668 }
 0x3b3   :  { %v679_v6 = vmul.f32 0.00390625, %v669_v3 }
 0x3b5   :  { %v1755_v7 = vsub.f32 %v649_v49, %v679_v6  ;;  %v1757_v8 = vsub.f32 %v651_v50, %v679_v6  ;;  %v758_v6 = vrot.slane %v125_v62, %v1693_v26 }
 0x3b6   :  { %v672_v9 = vpop.xlane.xlu1 %671 }
 0x3b7   :  { %v680_v12 = vmul.f32 0.00390625, %v672_v9  ;;  %v691_v13 = vmul.f32 %v1755_v7, %v1755_v7  ;;  %v692_v14 = vmul.f32 %v1757_v8, %v1757_v8 }
 0x3b9   :  { %v1763_v15 = vsub.f32 %v653_v54, %v680_v12  ;;  %v1765_v16 = vsub.f32 %v655_v55, %v680_v12  ;;  %v699_v19 = vadd.f32 %v692_v14, %v691_v13  ;;  %v754_v12 = vrot.slane %v125_v62, %v1691_v25 }
 0x3ba   :  { %v675_v20 = vpop.xlane.xlu0 %674 }
 0x3bb   :  { %v681_v21 = vmul.f32 0.00390625, %v675_v20  ;;  %700 = vadd.xlane.f32.xlu0 %v699_v19  ;;  %v693_v5 = vmul.f32 %v1763_v15, %v1763_v15  ;;  %v694_v4 = vmul.f32 %v1765_v16, %v1765_v16 }
 0x3bd   :  { %v1771_v22 = vsub.f32 %v659_v59, %v681_v21  ;;  %v1773_v23 = vsub.f32 %v661_v60, %v681_v21  ;;  %v702_v28 = vadd.f32 %v694_v4, %v693_v5  ;;  %v124_v60 = vld [vmem:[%s1830_s7] sm:$0x3] }
 0x3be   :  { %v678_v29 = vpop.xlane.xlu1 %677  ;;  %v735_v63 = vrot.slane %v124_v60, %v1691_v25 }
 0x3bf   :  { %v682_v30 = vmul.f32 0.00390625, %v678_v29  ;;  %703 = vadd.xlane.f32.xlu1 %v702_v28  ;;  %v695_v31 = vmul.f32 %v1771_v22, %v1771_v22  ;;  %v696_v32 = vmul.f32 %v1773_v23, %v1773_v23 }
 0x3c1   :  { %v1779_v11 = vsub.f32 %v663_v0, %v682_v30  ;;  %v1781_v33 = vsub.f32 %v665_v1, %v682_v30  ;;  %v705_v10 = vadd.f32 %v696_v32, %v695_v31  ;;  %v739_v0 = vrot.slane %v124_v60, %v1693_v26 }
 0x3c3   :  { %706 = vadd.xlane.f32.xlu0 %v705_v10  ;;  %v697_v34 = vmul.f32 %v1779_v11, %v1779_v11  ;;  %v698_v35 = vmul.f32 %v1781_v33, %v1781_v33 }
 0x3c5   :  { %v708_v36 = vadd.f32 %v698_v35, %v697_v34 }
 0x3c7   :  { %709 = vadd.xlane.f32.xlu1 %v708_v36 }
 0x444   :  { %v701_v49 = vpop.xlane.xlu0 %700 }
 0x445   :  { %v711_v50 = vmul.f32 0.00390625, %v701_v49 }
 0x447   :  { %v715_v51 = vadd.f32 1e-05, %v711_v50 }
 0x448   :  { %v704_v52 = vpop.xlane.xlu1 %703 }
 0x449   :  { %1426 = vrsqrt.f32 %v715_v51  ;;  %v712_v53 = vmul.f32 0.00390625, %v704_v52 }
 0x44b   :  { %v716_v54 = vadd.f32 1e-05, %v712_v53 }
 0x44c   :  { %v707_v55 = vpop.xlane.xlu0 %706 }
 0x44d   :  { %1428 = vrsqrt.f32 %v716_v54  ;;  %v713_v56 = vmul.f32 0.00390625, %v707_v55 }
 0x44f   :  { %v717_v57 = vadd.f32 1e-05, %v713_v56 }
 0x450   :  { %v710_v58 = vpop.xlane.xlu1 %709 }
 0x451   :  { %1430 = vrsqrt.f32 %v717_v57  ;;  %v714_v59 = vmul.f32 0.00390625, %v710_v58 }
 0x453   :  { %v718_v61 = vadd.f32 1e-05, %v714_v59 }
 0x455   :  { %1432 = vrsqrt.f32 %v718_v61 }
 0x456   :  { %v1427_v1 = vpop.eup %1426 }
 0x457   :  { %v723_v2 = vmul.f32 %v1427_v1, %v1755_v7  ;;  %v724_v3 = vmul.f32 %v1427_v1, %v1757_v8 }
 0x459   :  { %v743_v9 = vmul.f32 %v739_v0, %v724_v3  ;;  %v742_v13 = vmul.f32 %v735_v63, %v723_v2 }
 0x45a   :  { %v1429_v14 = vpop.eup %1428 }
 0x45b   :  { %v725_v19 = vmul.f32 %v1429_v14, %v1763_v15  ;;  %v726_v20 = vmul.f32 %v1429_v14, %v1765_v16  ;;  %v762_v21 = vadd.f32 %v758_v6, %v743_v9  ;;  %v761_v28 = vadd.f32 %v754_v12, %v742_v13 }
 0x45d   :  { %v745_v5 = vmul.f32 %v739_v0, %v726_v20  ;;  %v744_v4 = vmul.f32 %v735_v63, %v725_v19  ;;  %v770_v31 = vmax.f32 %v762_v21, 0.0  ;;  %v769_v25 = vmax.f32 %v761_v28, 0.0  ;;  %v1412_v28 = vld [vmem:[#allocation10 + $0x28] sm:$0xff]  }
 0x45e   :  { %v1431_v29 = vpop.eup %1430 }
 0x45f   :  { %v764_v30 = vadd.f32 %v758_v6, %v745_v5  ;;  %v763_v7 = vadd.f32 %v754_v12, %v744_v4  ;;  %v728_v8 = vmul.f32 %v1431_v29, %v1773_v23  ;;  %v727_v26 = vmul.f32 %v1431_v29, %v1771_v22  ;;  %v1410_v5 = vld [vmem:[#allocation10 + $0x38] sm:$0xff]   ;;  %v1411_v4 = vld [vmem:[#allocation10 + $0x30] sm:$0xff]   ;;  %v1413_v29 = vld [vmem:[#allocation10 + $0x20] sm:$0xff]  }
 0x460   :  { %1291 = vmatprep.subr.bf16.mxu0 %v1410_v5 }
 0x461   :  { %v772_v32 = vmax.f32 %v764_v30, 0.0  ;;  %v771_v10 = vmax.f32 %v763_v7, 0.0  ;;  %v747_v34 = vmul.f32 %v739_v0, %v728_v8  ;;  %v746_v15 = vmul.f32 %v735_v63, %v727_v26  ;;  %v1414_v30 = vld [vmem:[#allocation10 + $0x18] sm:$0xff]   ;;  %v1415_v7 = vld [vmem:[#allocation10 + $0x10] sm:$0xff]   ;;  %v1416_v8 = vld [vmem:[#allocation10 + $0x8] sm:$0xff]  }
 0x462   :  { %v1433_v35 = vpop.eup %1432  ;;  %v1417_v26 = vld [vmem:[#allocation10] sm:$0xff]  }
 0x463   :  { %v778_v36 = vpack.c.bf16 %v772_v32, %v770_v31  ;;  %v777_v16 = vpack.c.bf16 %v771_v10, %v769_v25  ;;  %v730_v37 = vmul.f32 %v1433_v35, %v1781_v33  ;;  %v729_v18 = vmul.f32 %v1433_v35, %v1779_v11  ;;  %v1225_v11 = vld [vmem:[%s1833_s10] ss:$0 sm:$0xff] }
 0x464   :  { %v766_v17 = vadd.f32 %v758_v6, %v747_v34  ;;  %v765_v39 = vadd.f32 %v754_v12, %v746_v15 }
 0x465   :  { %947 = vmatprep.mubr.bf16.mxu0 %v778_v36  ;;  %v749_v38 = vmul.f32 %v739_v0, %v730_v37  ;;  %v748_v23 = vmul.f32 %v735_v63, %v729_v18 }
 0x466   :  { %948 = vmatmul.mubr.bf16.vlgmr.msra.gmra.mxu0 %v777_v16  ;;  %v774_v41 = vmax.f32 %v766_v17, 0.0  ;;  %v773_v43 = vmax.f32 %v765_v39, 0.0 }
 0x467   :  { %v768_v22 = vadd.f32 %v758_v6, %v749_v38  ;;  %v767_v40 = vadd.f32 %v754_v12, %v748_v23  ;;  %1292 = vmatpush3.bf16.msra.mxu0 %v1410_v5  ;;  %v1242_v23 = vld [vmem:[%s1834_s11] ss:$0 sm:$0xff] }
 0x468   :  { %1293 = vmatprep.subr.bf16.mxu0 %v1411_v4 }
 0x469   :  { %v776_v42 = vmax.f32 %v768_v22, 0.0  ;;  %v775_v44 = vmax.f32 %v767_v40, 0.0 }
 0x46b   :  { %v780_v45 = vpack.c.bf16 %v776_v42, %v774_v41  ;;  %v779_v24 = vpack.c.bf16 %v775_v44, %v773_v43  ;;  %1294 = vmatpush3.bf16.msra.mxu0 %v1411_v4  ;;  %v1243_v41 = vld [vmem:[%s1835_s12] ss:$0 sm:$0xff] }
 0x46c   :  { %1295 = vmatprep.subr.bf16.mxu0 %v1412_v28 }
 0x46d   :  { %955 = vmatprep.mubr.bf16.mxu0 %v780_v45 }
 0x46e   :  { %956 = vmatmul.mubr.bf16.gmra.mxu0 %v779_v24 }
 0x46f   :  { %1296 = vmatpush3.bf16.msra.mxu0 %v1412_v28 }
 0x470   :  { %1297 = vmatprep.subr.bf16.mxu0 %v1413_v29 }
 0x473   :  { %1298 = vmatpush3.bf16.msra.mxu0 %v1413_v29 }
 0x474   :  { %1299 = vmatprep.subr.bf16.mxu0 %v1414_v30 }
 0x477   :  { %1300 = vmatpush3.bf16.msra.mxu0 %v1414_v30 }
 0x478   :  { %1301 = vmatprep.subr.bf16.mxu0 %v1415_v7 }
 0x47b   :  { %1302 = vmatpush3.bf16.msra.mxu0 %v1415_v7 }
 0x47c   :  { %1303 = vmatprep.subr.bf16.mxu0 %v1416_v8 }
 0x47f   :  { %1304 = vmatpush3.bf16.msra.mxu0 %v1416_v8 }
 0x480   :  { %1305 = vmatprep.subr.bf16.mxu0 %v1417_v26 }
 0x483   :  { %1306 = vmatpush3.bf16.msra.mxu0 %v1417_v26 }
 0x526   :  { %v1269_v27 = vpop.f32.mrf.mxu0 }
 0x528   :  { %v1270_v33 = vpop.f32.mrf.mxu0 }
 0x529   :  { %v1271_v46 = vadd.f32 %v1270_v33, %v1269_v27 }
 0x52a   :  { %v1272_v47 = vpop.f32.mrf.mxu0 }
 0x52b   :  { %v950_v48 = vadd.f32 %v1271_v46, %v1225_v11 }
 0x52c   :  { %v1273_v49 = vpop.f32.mrf.mxu0 }
 0x52d   :  { %v1274_v50 = vadd.f32 %v1273_v49, %v1272_v47  ;;  %964 = vadd.xlane.f32.xlu0 %v950_v48 }
 0x52e   :  { %v1275_v51 = vpop.f32.mrf.mxu0 }
 0x52f   :  { %v953_v52 = vadd.f32 %v1274_v50, %v1225_v11 }
 0x530   :  { %v1276_v53 = vpop.f32.mrf.mxu0 }
 0x531   :  { %v1277_v54 = vadd.f32 %v1276_v53, %v1275_v51  ;;  %966 = vadd.xlane.f32.xlu1 %v953_v52 }
 0x532   :  { %v1278_v55 = vpop.f32.mrf.mxu0 }
 0x533   :  { %v958_v56 = vadd.f32 %v1277_v54, %v1225_v11 }
 0x534   :  { %v1279_v57 = vpop.f32.mrf.mxu0 }
 0x535   :  { %v1280_v58 = vadd.f32 %v1279_v57, %v1278_v55  ;;  %968 = vadd.xlane.f32.xlu0 %v958_v56 }
 0x537   :  { %v961_v59 = vadd.f32 %v1280_v58, %v1225_v11 }
 0x539   :  { %970 = vadd.xlane.f32.xlu1 %v961_v59 }
 0x5b6   :  { %v965_v60 = vpop.xlane.xlu0 %964 }
 0x5b7   :  { %v973_v61 = vmul.f32 0.0078125, %v965_v60 }
 0x5b9   :  { %v977_v62 = vsub.f32 %v950_v48, %v973_v61 }
 0x5ba   :  { %v967_v63 = vpop.xlane.xlu1 %966 }
 0x5bb   :  { %v974_v0 = vmul.f32 0.0078125, %v967_v63  ;;  %v981_v1 = vmul.f32 %v977_v62, %v977_v62 }
 0x5bd   :  { %v978_v2 = vsub.f32 %v953_v52, %v974_v0  ;;  %985 = vadd.xlane.f32.xlu0 %v981_v1 }
 0x5be   :  { %v969_v3 = vpop.xlane.xlu0 %968 }
 0x5bf   :  { %v975_v6 = vmul.f32 0.0078125, %v969_v3  ;;  %v982_v9 = vmul.f32 %v978_v2, %v978_v2 }
 0x5c1   :  { %v979_v12 = vsub.f32 %v958_v56, %v975_v6  ;;  %987 = vadd.xlane.f32.xlu1 %v982_v9  ;;  %v1244_v56 = vld [vmem:[%s1837_s14] ss:$0 sm:$0xff] }
 0x5c2   :  { %v971_v13 = vpop.xlane.xlu1 %970 }
 0x5c3   :  { %v976_v14 = vmul.f32 0.0078125, %v971_v13  ;;  %v983_v19 = vmul.f32 %v979_v12, %v979_v12 }
 0x5c5   :  { %v980_v20 = vsub.f32 %v961_v59, %v976_v14  ;;  %989 = vadd.xlane.f32.xlu0 %v983_v19 }
 0x5c7   :  { %v984_v21 = vmul.f32 %v980_v20, %v980_v20 }
 0x5c9   :  { %991 = vadd.xlane.f32.xlu1 %v984_v21 }
 0x646   :  { %v986_v31 = vpop.xlane.xlu0 %985 }
 0x647   :  { %v993_v32 = vmul.f32 0.0078125, %v986_v31 }
 0x649   :  { %v997_v25 = vadd.f32 1e-05, %v993_v32 }
 0x64a   :  { %v988_v10 = vpop.xlane.xlu1 %987 }
 0x64b   :  { %1434 = vrsqrt.f32 %v997_v25  ;;  %v994_v34 = vmul.f32 0.0078125, %v988_v10 }
 0x64d   :  { %v998_v35 = vadd.f32 1e-05, %v994_v34 }
 0x64e   :  { %v990_v15 = vpop.xlane.xlu0 %989 }
 0x64f   :  { %1436 = vrsqrt.f32 %v998_v35  ;;  %v995_v36 = vmul.f32 0.0078125, %v990_v15 }
 0x651   :  { %v999_v16 = vadd.f32 1e-05, %v995_v36 }
 0x652   :  { %v992_v37 = vpop.xlane.xlu1 %991 }
 0x653   :  { %1438 = vrsqrt.f32 %v999_v16  ;;  %v996_v18 = vmul.f32 0.0078125, %v992_v37 }
 0x655   :  { %v1000_v38 = vadd.f32 1e-05, %v996_v18 }
 0x657   :  { %1440 = vrsqrt.f32 %v1000_v38 }
 0x658   :  { %v1435_v17 = vpop.eup %1434 }
 0x659   :  { %v1005_v39 = vmul.f32 %v1435_v17, %v977_v62 }
 0x65b   :  { %v1015_v22 = vmul.f32 %v1242_v23, %v1005_v39 }
 0x65c   :  { %v1437_v40 = vpop.eup %1436 }
 0x65d   :  { %v1006_v42 = vmul.f32 %v1437_v40, %v978_v2  ;;  %v1025_v44 = vadd.f32 %v1243_v41, %v1015_v22 }
 0x65f   :  { %v1016_v43 = vmul.f32 %v1242_v23, %v1006_v42  ;;  %v1029_v33 = vmax.f32 %v1025_v44, 0.0 }
 0x660   :  { %v1439_v45 = vpop.eup %1438 }
 0x661   :  { %v1007_v24 = vmul.f32 %v1439_v45, %v979_v12  ;;  %v1026_v27 = vadd.f32 %v1243_v41, %v1016_v43 }
 0x663   :  { %v1030_v11 = vmax.f32 %v1026_v27, 0.0  ;;  %v1017_v46 = vmul.f32 %v1242_v23, %v1007_v24 }
 0x664   :  { %v1441_v47 = vpop.eup %1440 }
 0x665   :  { %v1008_v48 = vmul.f32 %v1441_v47, %v980_v20  ;;  %v1033_v49 = vpack.c.bf16 %v1030_v11, %v1029_v33  ;;  %v1027_v51 = vadd.f32 %v1243_v41, %v1017_v46 }
 0x667   :  { %1307 = vmatprep.mubr.bf16.mxu0 %v1033_v49  ;;  %v1018_v50 = vmul.f32 %v1242_v23, %v1008_v48  ;;  %v1031_v53 = vmax.f32 %v1027_v51, 0.0 }
 0x669   :  { %v1028_v52 = vadd.f32 %v1243_v41, %v1018_v50 }
 0x66b   :  { %v1032_v54 = vmax.f32 %v1028_v52, 0.0 }
 0x66d   :  { %v1034_v55 = vpack.c.bf16 %v1032_v54, %v1031_v53 }
 0x66f   :  { %1308 = vmatmul.mubr.bf16.vlgmr.msra.gmra.mxu0 %v1034_v55 }
 0x72f   :  { %v1309_v57 = vpop.f32.mrf.mxu0 }
 0x730   :  { %v1148_v58 = vadd.f32 %v1309_v57, %v1244_v56 }
 0x731   :  { %v1139_v59 = vpop.f32.mrf.mxu0 }
 0x732   :  { %1156 = vst [vmem:[#allocation11 + $0x10] sm:$0xff] %v1148_v58  ;;  %v1140_v60 = vadd.f32 %v1244_v56, %v1139_v59 }
 0x733   :  { %v1310_v61 = vpop.f32.mrf.mxu0 }
 0x734   :  { %1154 = vst [vmem:[#allocation11] sm:$0xff] %v1140_v60  ;;  %v1151_v62 = vadd.f32 %v1310_v61, %v1244_v56 }
 0x735   :  { %v1142_v63 = vpop.f32.mrf.mxu0 }
 0x736   :  { %1157 = vst [vmem:[#allocation11 + $0x18] sm:$0xff] %v1151_v62  ;;  %v1143_v0 = vadd.f32 %v1244_v56, %v1142_v63 }
 0x738   :  { %1155 = vst [vmem:[#allocation11 + $0x8] sm:$0xff] %v1143_v0 }
 0x739   :  { %1553 = shalt.err (!%p1550_p1)
}
 0x73a   :  { %1169 = dma.vmem_to_hbm [thread:$0]  %s1164_s26, 512, %s1838_s15, [#allocation4], %s1572_s23, %s1572_s23, %s1573_s24  }
 0x73b   :  { %1568 = dma.done.wait [#allocation4], 512  }
 0x73c   :  { %1569 = vsyncadd [#allocation4], 4294966784 }
 0x73d   :  { %1173 = vsyncpa [#allocation3], 1 }
 0x73e   :  { %1174 = vsyncpa [#allocation6], 1 }
 0x73f   :  { %1175 = vsyncpa [#allocation9], 1 }
 0x740   :  { %1176 = vsyncpa [#allocation4], 1 }

</bundles_post_ra>
